<compile_context>
chip_gen: v6e
topology: v6e:2x2x1
jax: 0.10.0
libtpu: 0.0.40
codegen_flags: <defaults>
</compile_context>

<pallas_src>
import functools

import jax
import jax.numpy as jnp
from jax.experimental import pallas as pl
from jax.experimental.pallas import tpu as pltpu


_LANE = 128                      # lane width: pad hidden (VMEM-resident) dims to this
_SUBLANE = 8
_MAX_TILE = 512                  # batch-tile cap (sweep 256/512/1024; 512 ~85% HBM roofline)
_BUFFER1_WEIGHT_BYTES = 4 << 20  # above this, single-buffer the resident weights


def _round_up(x, m):
    return ((x + m - 1) // m) * m


def _num_tensorcores():
    """2 TensorCores per chip on v7x; 1 on v5e/v6e.  Robust fallback to 1."""
    try:
        kind = jax.devices()[0].device_kind.lower()
    except Exception:
        return 1
    return 2 if ("v7" in kind or "7x" in kind) else 1


def _choose_batch_tile(B):
    nc = _num_tensorcores()
    if nc >= 2:
        # v7x: keep >= 2 grid steps so the second TensorCore gets work, while
        # still using the biggest tile that amortizes per-step (~0.35us) overhead.
        half = _round_up(max(pl.cdiv(B, 2), 1), _SUBLANE)
        return max(_SUBLANE, min(_MAX_TILE, half))
    # v5e / v6e: the grid is a sequential loop on one TC -- splitting a small
    # batch is pure per-step overhead.  One big (sublane-rounded) tile.
    return max(_SUBLANE, min(_MAX_TILE, _round_up(B, _SUBLANE)))


def _mlp_kernel(n_layers, *refs):
    """Fused MLP forward. refs = (y, W1, b1, ..., W_{L+1}, b_{L+1}, out).

    Matmuls run on the MXU with f32 accumulation; tanh goes to the EUP.
    """
    y_ref = refs[0]
    out_ref = refs[-1]
    param_refs = refs[1:-1]  # 2 * (n_layers + 1) refs

    x = y_ref[...]
    # Hidden layers: tanh(x @ W + b)
    for li in range(n_layers):
        w = param_refs[2 * li][...]
        b = param_refs[2 * li + 1][...]
        x = jnp.tanh(jnp.dot(x, w, preferred_element_type=jnp.float32) + b)
    # Output layer: relu(x @ W + b)   (output_activation='relu')
    w_out = param_refs[2 * n_layers][...]
    b_out = param_refs[2 * n_layers + 1][...]
    z = jnp.dot(x, w_out, preferred_element_type=jnp.float32) + b_out
    out_ref[...] = jnp.maximum(z, 0.0).astype(out_ref.dtype)


def mlp_forward(y, params, *, batch_tile=None):
    """Run the fused MLP Pallas kernel.

    y:       (B, y_dim) float32
    params:  list of (W, b) with W: (in, out), b: (1, out)  -- unpadded
    Returns: (B, z_dim) float32 (pre-squeeze)
    """
    n_layers = len(params) - 1
    B, y_dim = y.shape
    z_dim = params[-1][0].shape[1]

    # --- batch tiling (generation-aware) ---------------------------------
    if batch_tile is None:
        batch_tile = _choose_batch_tile(B)
    B_pad = _round_up(B, batch_tile)

    # --- feature dims ------------------------------------------------------
    # HBM-facing dims (y_dim, z_dim) stay UNPADDED so streamed HBM traffic is
    # not inflated; only the VMEM-resident hidden dims are padded to 128 lanes
    # (keeps hidden activations / weight tiles lane-dense, numerically exact).
    dims = [y_dim] + [w.shape[1] for (w, _) in params]
    dims_p = list(dims)
    for li in range(1, len(dims) - 1):  # hidden dims only
        dims_p[li] = _round_up(dims[li], _LANE)

    y_p = y if B_pad == B else jnp.pad(y, ((0, B_pad - B), (0, 0)))

    flat_params = []
    for li, (w, b) in enumerate(params):
        din, dout = dims_p[li], dims_p[li + 1]
        flat_params.append(jnp.pad(w, ((0, din - w.shape[0]), (0, dout - w.shape[1]))))
        flat_params.append(jnp.pad(b, ((0, 0), (0, dout - b.shape[1]))))

    param_bytes = sum(int(p.size) * p.dtype.itemsize for p in flat_params)

    # --- specs -------------------------------------------------------------
    # Input / output tiled over batch; weights / biases passed whole (constant
    # block index -> fetched once, not per grid step).  When resident weights
    # get large, drop them to single-buffering to fit the v7x 64 MiB VMEM.
    in_specs = [pl.BlockSpec((batch_tile, dims_p[0]), lambda i: (i, 0))]
    single_buffer_weights = param_bytes > _BUFFER1_WEIGHT_BYTES
    for p in flat_params:
        if single_buffer_weights:
            in_specs.append(
                pl.BlockSpec(p.shape, lambda i: (0, 0), pipeline_mode=pl.Buffered(1)))
        else:
            in_specs.append(pl.BlockSpec(p.shape, lambda i: (0, 0)))
    out_spec = pl.BlockSpec((batch_tile, dims_p[-1]), lambda i: (i, 0))
    # TODO(synk): for layer_size >= ~2048 on v7x, also tile the out-feature dim
    # as a second grid axis instead of keeping whole weights resident.

    # --- VMEM budget (covers v5e's 16 MiB scoped default) -------------------
    io_tile_bytes = batch_tile * (dims_p[0] + dims_p[-1]) * 4
    act_bytes = batch_tile * max(dims_p) * 4
    bufs = 1 if single_buffer_weights else 2
    vmem_need = 2 * io_tile_bytes + bufs * param_bytes + 2 * act_bytes + (1 << 20)
    vmem_limit = int(min(max(vmem_need, 16 << 20), 64 << 20))

    # --- cost estimate (true, unpadded work) --------------------------------
    flops = sum(2 * B * dims[li] * dims[li + 1] for li in range(len(dims) - 1))
    transcendentals = B * sum(dims[1:-1])
    bytes_accessed = 4 * (B * (y_dim + z_dim)
                          + sum(int(w.size) + int(b.size) for (w, b) in params))
    cost = pl.CostEstimate(flops=int(flops),
                           transcendentals=int(transcendentals),
                           bytes_accessed=int(bytes_accessed))

    kernel = functools.partial(_mlp_kernel, n_layers)

    z_full = pl.pallas_call(
        kernel,
        out_shape=jax.ShapeDtypeStruct((B_pad, dims_p[-1]), jnp.float32),
        grid=(B_pad // batch_tile,),
        in_specs=in_specs,
        out_specs=out_spec,
        compiler_params=pltpu.CompilerParams(
            dimension_semantics=("parallel",),  # batch axis -> both TCs on v7x
            vmem_limit_bytes=vmem_limit,
        ),
        cost_estimate=cost,
    )(y_p, *flat_params)

    # Only the batch padding (if any) needs slicing; output feature dim is exact.
    return z_full if B_pad == B else z_full[:B]


def init_params(key, y_dim, z_dim, n_layers, layer_size):
    """Deterministic synthetic init matching nn.Linear shapes.

    PyTorch nn.Linear(in, out) -> weight (out, in), bias (out,).
    We store the transposed weight (in, out) and bias as (1, out),
    initialized uniform(-1/sqrt(in), 1/sqrt(in)) like torch's default.
    """
    params = []
    in_size = y_dim
    sizes = [layer_size] * n_layers + [z_dim]
    for out_size in sizes:
        key, kw, kb = jax.random.split(key, 3)
        bound = 1.0 / jnp.sqrt(jnp.float32(in_size))
        w = jax.random.uniform(kw, (in_size, out_size), jnp.float32, -bound, bound)
        b = jax.random.uniform(kb, (1, out_size), jnp.float32, -bound, bound)
        params.append((w, b))
        in_size = out_size
    return params


def mlpc_model_forward(y, params):
    """Equivalent of MLPCModel.forward: MLP then torch.squeeze."""
    z = mlp_forward(y, params)
    return jnp.squeeze(z)  # torch.squeeze removes all size-1 dims


def _reference_forward(y, params):
    """Pure-JAX reference for correctness check."""
    x = y
    n_layers = len(params) - 1
    for li in range(n_layers):
        w, b = params[li]
        x = jnp.tanh(x @ w + b)
    w, b = params[-1]
    z = jnp.maximum(x @ w + b, 0.0)
    return jnp.squeeze(z)


if __name__ == "__main__":
    # Small shapes consistent with MLPCModel(y_dim, z_dim, n_layers, layer_size).
    B, Y_DIM, Z_DIM, N_LAYERS, LAYER_SIZE = 64, 16, 8, 2, 32

    key = jax.random.PRNGKey(0)
    key, ky = jax.random.split(key)
    y = jax.random.normal(ky, (B, Y_DIM), jnp.float32)

    params = init_params(key, Y_DIM, Z_DIM, N_LAYERS, LAYER_SIZE)

    z_pred = mlpc_model_forward(y, params)
    z_pred = jax.block_until_ready(z_pred)

    z_ref = _reference_forward(y, params)
    assert z_pred.shape == z_ref.shape, (z_pred.shape, z_ref.shape)
    assert jnp.allclose(z_pred, z_ref, atol=1e-5, rtol=1e-5), "mismatch vs reference"

    print("KERNEL_OK")
</pallas_src>

<mosaic_0001>
module attributes {stable_mosaic.version = 11 : i64} {
  func.func @_mlp_kernel(%arg0: i32, %arg1: memref<64x16xf32, #tpu.memory_space<vmem>>, %arg2: memref<16x128xf32, #tpu.memory_space<vmem>>, %arg3: memref<1x128xf32, #tpu.memory_space<vmem>>, %arg4: memref<128x128xf32, #tpu.memory_space<vmem>>, %arg5: memref<1x128xf32, #tpu.memory_space<vmem>>, %arg6: memref<128x8xf32, #tpu.memory_space<vmem>>, %arg7: memref<1x8xf32, #tpu.memory_space<vmem>>, %arg8: memref<64x8xf32, #tpu.memory_space<vmem>>) attributes {dimension_semantics = [#tpu.dimension_semantics<parallel>], iteration_bounds = array<i64: 1>, scalar_prefetch = 0 : i64, scratch_operands = 0 : i64, tpu.core_type = #tpu.core_type<tc>, window_params = [{transform_indices = @transform_0, window_bounds = array<i64: 64, 16>}, {pipeline_mode = #tpu.pipeline_mode<synchronous>, transform_indices = @transform_1, window_bounds = array<i64: 16, 128>}, {pipeline_mode = #tpu.pipeline_mode<synchronous>, transform_indices = @transform_2, window_bounds = array<i64: 1, 128>}, {pipeline_mode = #tpu.pipeline_mode<synchronous>, transform_indices = @transform_3, window_bounds = array<i64: 128, 128>}, {pipeline_mode = #tpu.pipeline_mode<synchronous>, transform_indices = @transform_4, window_bounds = array<i64: 1, 128>}, {pipeline_mode = #tpu.pipeline_mode<synchronous>, transform_indices = @transform_5, window_bounds = array<i64: 128, 8>}, {pipeline_mode = #tpu.pipeline_mode<synchronous>, transform_indices = @transform_6, window_bounds = array<i64: 1, 8>}, {transform_indices = @transform_7, window_bounds = array<i64: 64, 8>}]} {
    %c0 = arith.constant 0 : index
    %c0_0 = arith.constant 0 : index
    %0 = vector.load %arg1[%c0, %c0_0] : memref<64x16xf32, #tpu.memory_space<vmem>>, vector<64x16xf32>
    %c0_1 = arith.constant 0 : index
    %c0_2 = arith.constant 0 : index
    %1 = vector.load %arg2[%c0_1, %c0_2] : memref<16x128xf32, #tpu.memory_space<vmem>>, vector<16x128xf32>
    %c0_3 = arith.constant 0 : index
    %c0_4 = arith.constant 0 : index
    %2 = vector.load %arg3[%c0_3, %c0_4] : memref<1x128xf32, #tpu.memory_space<vmem>>, vector<1x128xf32>
    %cst = arith.constant dense<0.000000e+00> : vector<64x128xf32>
    %3 = tpu.matmul %0, %1, %cst {dimension_numbers = #tpu.dot_dimension_numbers<[1], [0], [0], [1], [0, 0, 1, 1], [], []>} : vector<64x16xf32>, vector<16x128xf32>, vector<64x128xf32> -> vector<64x128xf32>
    %4 = vector.broadcast %2 : vector<1x128xf32> to vector<64x128xf32>
    %5 = arith.addf %3, %4 : vector<64x128xf32>
    %6 = math.tanh %5 : vector<64x128xf32>
    %c0_5 = arith.constant 0 : index
    %c0_6 = arith.constant 0 : index
    %7 = vector.load %arg4[%c0_5, %c0_6] : memref<128x128xf32, #tpu.memory_space<vmem>>, vector<128x128xf32>
    %c0_7 = arith.constant 0 : index
    %c0_8 = arith.constant 0 : index
    %8 = vector.load %arg5[%c0_7, %c0_8] : memref<1x128xf32, #tpu.memory_space<vmem>>, vector<1x128xf32>
    %cst_9 = arith.constant dense<0.000000e+00> : vector<64x128xf32>
    %9 = tpu.matmul %6, %7, %cst_9 {dimension_numbers = #tpu.dot_dimension_numbers<[1], [0], [0], [1], [0, 0, 1, 1], [], []>} : vector<64x128xf32>, vector<128x128xf32>, vector<64x128xf32> -> vector<64x128xf32>
    %10 = vector.broadcast %8 : vector<1x128xf32> to vector<64x128xf32>
    %11 = arith.addf %9, %10 : vector<64x128xf32>
    %12 = math.tanh %11 : vector<64x128xf32>
    %c0_10 = arith.constant 0 : index
    %c0_11 = arith.constant 0 : index
    %13 = vector.load %arg6[%c0_10, %c0_11] : memref<128x8xf32, #tpu.memory_space<vmem>>, vector<128x8xf32>
    %c0_12 = arith.constant 0 : index
    %c0_13 = arith.constant 0 : index
    %14 = vector.load %arg7[%c0_12, %c0_13] : memref<1x8xf32, #tpu.memory_space<vmem>>, vector<1x8xf32>
    %cst_14 = arith.constant dense<0.000000e+00> : vector<64x8xf32>
    %15 = tpu.matmul %12, %13, %cst_14 {dimension_numbers = #tpu.dot_dimension_numbers<[1], [0], [0], [1], [0, 0, 1, 1], [], []>} : vector<64x128xf32>, vector<128x8xf32>, vector<64x8xf32> -> vector<64x8xf32>
    %16 = vector.broadcast %14 : vector<1x8xf32> to vector<64x8xf32>
    %17 = arith.addf %15, %16 : vector<64x8xf32>
    %cst_15 = arith.constant 0.000000e+00 : f32
    %18 = vector.broadcast %cst_15 : f32 to vector<64x8xf32>
    %19 = arith.maximumf %17, %18 : vector<64x8xf32>
    %c0_16 = arith.constant 0 : index
    %c0_17 = arith.constant 0 : index
    %20 = vector.load %arg8[%c0_16, %c0_17] : memref<64x8xf32, #tpu.memory_space<vmem>>, vector<64x8xf32>
    tpu.vector_store %arg8[%c0_16, %c0_17], %19 {strides = array<i32>} : memref<64x8xf32, #tpu.memory_space<vmem>>, vector<64x8xf32>,
    return
  }
  func.func @transform_0(%arg0: i32) -> (i32, i32) {
    %c0_i32 = arith.constant 0 : i32
    %c0_i32_0 = arith.constant 0 : i32
    return %arg0, %c0_i32 : i32, i32
  }
  func.func @transform_1(%arg0: i32) -> (i32, i32) {
    %c0_i32 = arith.constant 0 : i32
    %c0_i32_0 = arith.constant 0 : i32
    %c0_i32_1 = arith.constant 0 : i32
    return %c0_i32, %c0_i32_0 : i32, i32
  }
  func.func @transform_2(%arg0: i32) -> (i32, i32) {
    %c0_i32 = arith.constant 0 : i32
    %c0_i32_0 = arith.constant 0 : i32
    %c0_i32_1 = arith.constant 0 : i32
    return %c0_i32, %c0_i32_0 : i32, i32
  }
  func.func @transform_3(%arg0: i32) -> (i32, i32) {
    %c0_i32 = arith.constant 0 : i32
    %c0_i32_0 = arith.constant 0 : i32
    %c0_i32_1 = arith.constant 0 : i32
    return %c0_i32, %c0_i32_0 : i32, i32
  }
  func.func @transform_4(%arg0: i32) -> (i32, i32) {
    %c0_i32 = arith.constant 0 : i32
    %c0_i32_0 = arith.constant 0 : i32
    %c0_i32_1 = arith.constant 0 : i32
    return %c0_i32, %c0_i32_0 : i32, i32
  }
  func.func @transform_5(%arg0: i32) -> (i32, i32) {
    %c0_i32 = arith.constant 0 : i32
    %c0_i32_0 = arith.constant 0 : i32
    %c0_i32_1 = arith.constant 0 : i32
    return %c0_i32, %c0_i32_0 : i32, i32
  }
  func.func @transform_6(%arg0: i32) -> (i32, i32) {
    %c0_i32 = arith.constant 0 : i32
    %c0_i32_0 = arith.constant 0 : i32
    %c0_i32_1 = arith.constant 0 : i32
    return %c0_i32, %c0_i32_0 : i32, i32
  }
  func.func @transform_7(%arg0: i32) -> (i32, i32) {
    %c0_i32 = arith.constant 0 : i32
    %c0_i32_0 = arith.constant 0 : i32
    return %arg0, %c0_i32 : i32, i32
  }
}

</mosaic_0001>

<bundles_post_ra>
// kernel: tpu_custom_call.1
= control target key start
LH: loop header
LB: loop body
LE: loop exit
PB: predicated region body
PF: predicated region fallthrough
CT: control target
= control target key end

     0   :  { %vm43_vm0 = vcmask 130048   ;;  %vm453_vm1 = vcmask 64512   ;;  %s886_s1 = inlined_call_operand.vmem [shape: f32[16,128], index: 1, kind: input, shape index: {}]   ;;  %s887_s0 = inlined_call_operand.vmem [shape: f32[64,16], index: 0, kind: input, shape index: {}]   ;;  %s888_s3 = inlined_call_operand.vmem [shape: f32[128,128], index: 3, kind: input, shape index: {}]   ;;  %s889_s5 = inlined_call_operand.vmem [shape: f32[128,8], index: 5, kind: input, shape index: {}]   ;;  %s890_s2 = inlined_call_operand.vmem [shape: f32[1,128], index: 2, kind: input, shape index: {}]   ;;  %s891_s4 = inlined_call_operand.vmem [shape: f32[1,128], index: 4, kind: input, shape index: {}]   ;;  %s892_s6 = inlined_call_operand.vmem [shape: f32[1,8], index: 6, kind: input, shape index: {}]   ;;  %s893_s7 = inlined_call_operand.vmem [shape: f32[64,8], index: 7, kind: output, shape index: {}]  }
   0x1   :  { %v35_v0 = vld [vmem:[%s886_s1 + $0x8] sm:$0xff]  ;;  %v34_v1 = vld [vmem:[%s886_s1] sm:$0xff]  ;;  %v28_v4 = vld [vmem:[%s887_s0 + $0x10] sm:$0xff] }
   0x2   :  { %v26_v2 = vld [vmem:[%s887_s0] sm:$0xff]  ;;  %535 = vmatprep.subr.mxu0 %v35_v0  ;;  %v27_v3 = vld [vmem:[%s887_s0 + $0x8] sm:$0xff]  ;;  %v196_v5 = vld [vmem:[%s888_s3 + $0x78] sm:$0xff] }
   0x3   :  { %539 = vmatprep.mubr.msk.f32.mxu0 %vm43_vm0, %v26_v2  ;;  %536 = vmatpush3.msra.mxu0 %v35_v0  ;;  %v195_v6 = vld [vmem:[%s888_s3 + $0x70] sm:$0xff]  ;;  %v194_v7 = vld [vmem:[%s888_s3 + $0x68] sm:$0xff]  ;;  %v29_v8 = vld [vmem:[%s887_s0 + $0x18] sm:$0xff] }
   0x4   :  { %537 = vmatprep.subr.mxu0 %v34_v1  ;;  %551 = vmatprep.subr.mxu1 %v196_v5  ;;  %v30_v9 = vld [vmem:[%s887_s0 + $0x20] sm:$0xff]  ;;  %v192_v11 = vld [vmem:[%s888_s3 + $0x58] sm:$0xff]  ;;  %v31_v12 = vld [vmem:[%s887_s0 + $0x28] sm:$0xff] }
   0x5   :  { %538 = vmatpush3.msra.mxu0 %v34_v1  ;;  %552 = vmatpush3.msra.mxu1 %v196_v5  ;;  %v193_v10 = vld [vmem:[%s888_s3 + $0x60] sm:$0xff]  ;;  %v32_v13 = vld [vmem:[%s887_s0 + $0x30] sm:$0xff]  ;;  %v33_v15 = vld [vmem:[%s887_s0 + $0x38] sm:$0xff] }
   0x6   :  { %540 = vmatmul.mubr.msk.f32.vlgmr.msra.gmra.mxu0 %vm43_vm0, %v27_v3  ;;  %553 = vmatprep.subr.mxu1 %v195_v6  ;;  %v191_v14 = vld [vmem:[%s888_s3 + $0x50] sm:$0xff]  ;;  %v190_v16 = vld [vmem:[%s888_s3 + $0x48] sm:$0xff]  ;;  %v189_v17 = vld [vmem:[%s888_s3 + $0x40] sm:$0xff] }
   0x7   :  { %542 = vmatprep.mubr.msk.f32.mxu0 %vm43_vm0, %v28_v4  ;;  %554 = vmatpush3.msra.mxu1 %v195_v6  ;;  %v188_v18 = vld [vmem:[%s888_s3 + $0x38] sm:$0xff]  ;;  %v187_v19 = vld [vmem:[%s888_s3 + $0x30] sm:$0xff]  ;;  %v186_v20 = vld [vmem:[%s888_s3 + $0x28] sm:$0xff] }
   0x8   :  { %555 = vmatprep.subr.mxu1 %v194_v7  ;;  %v185_v21 = vld [vmem:[%s888_s3 + $0x20] sm:$0xff]  ;;  %v184_v22 = vld [vmem:[%s888_s3 + $0x18] sm:$0xff]  ;;  %v183_v23 = vld [vmem:[%s888_s3 + $0x10] sm:$0xff] }
   0x9   :  { %556 = vmatpush3.msra.mxu1 %v194_v7  ;;  %v182_v24 = vld [vmem:[%s888_s3 + $0x8] sm:$0xff]  ;;  %v181_v25 = vld [vmem:[%s888_s3] sm:$0xff]  ;;  %v332_v26 = vld [vmem:[%s889_s5 + $0x78] sm:$0xff] }
   0xa   :  { %543 = vmatmul.mubr.msk.f32.gmra.mxu0 %vm43_vm0, %v29_v8  ;;  %557 = vmatprep.subr.mxu1 %v193_v10  ;;  %v331_v27 = vld [vmem:[%s889_s5 + $0x70] sm:$0xff]  ;;  %v330_v28 = vld [vmem:[%s889_s5 + $0x68] sm:$0xff]  ;;  %v329_v29 = vld [vmem:[%s889_s5 + $0x60] sm:$0xff] }
   0xb   :  { %545 = vmatprep.mubr.msk.f32.mxu0 %vm43_vm0, %v30_v9  ;;  %558 = vmatpush3.msra.mxu1 %v193_v10  ;;  %v328_v30 = vld [vmem:[%s889_s5 + $0x58] sm:$0xff]  ;;  %v327_v31 = vld [vmem:[%s889_s5 + $0x50] sm:$0xff]  ;;  %v466_v32 = vld [vmem:[%s890_s2] ss:$0 sm:$0xff] }
   0xc   :  { %559 = vmatprep.subr.mxu1 %v192_v11  ;;  %595 = vmatprep.subr.mxu0 %v332_v26  ;;  %v326_v57 = vld [vmem:[%s889_s5 + $0x48] sm:$0xff]  ;;  %v325_v58 = vld [vmem:[%s889_s5 + $0x40] sm:$0xff]  ;;  %v324_v59 = vld [vmem:[%s889_s5 + $0x38] sm:$0xff] }
   0xd   :  { %560 = vmatpush3.msra.mxu1 %v192_v11  ;;  %596 = vmatpush3.msra.mxu0 %v332_v26  ;;  %v323_v60 = vld [vmem:[%s889_s5 + $0x30] sm:$0xff]  ;;  %v322_v61 = vld [vmem:[%s889_s5 + $0x28] sm:$0xff]  ;;  %v321_v62 = vld [vmem:[%s889_s5 + $0x20] sm:$0xff] }
   0xe   :  { %546 = vmatmul.mubr.msk.f32.gmra.mxu0 %vm43_vm0, %v31_v12  ;;  %561 = vmatprep.subr.mxu1 %v191_v14  ;;  %v320_v63 = vld [vmem:[%s889_s5 + $0x18] sm:$0xff]  ;;  %v319_v0 = vld [vmem:[%s889_s5 + $0x10] sm:$0xff]  ;;  %v318_v1 = vld [vmem:[%s889_s5 + $0x8] sm:$0xff] }
   0xf   :  { %548 = vmatprep.mubr.msk.f32.mxu0 %vm43_vm0, %v32_v13  ;;  %562 = vmatpush3.msra.mxu1 %v191_v14  ;;  %v317_v2 = vld [vmem:[%s889_s5] sm:$0xff] }
  0x10   :  { %563 = vmatprep.subr.mxu1 %v190_v16  ;;  %597 = vmatprep.subr.mxu0 %v331_v27  ;;  %v475_v3 = vld [vmem:[%s891_s4] ss:$0 sm:$0xff] }
  0x11   :  { %564 = vmatpush3.msra.mxu1 %v190_v16  ;;  %598 = vmatpush3.msra.mxu0 %v331_v27 }
  0x12   :  { %549 = vmatmul.mubr.msk.f32.gmra.mxu0 %vm43_vm0, %v33_v15  ;;  %565 = vmatprep.subr.mxu1 %v189_v17 }
  0x13   :  { %566 = vmatpush3.msra.mxu1 %v189_v17  ;;  %599 = vmatprep.subr.mxu0 %v330_v28 }
  0x14   :  { %567 = vmatprep.subr.mxu1 %v188_v18  ;;  %600 = vmatpush3.msra.mxu0 %v330_v28  ;;  %v476_v28 = vld [vmem:[%s892_s6] ss:$0 sm:$0xff] }
  0x15   :  { %568 = vmatpush3.msra.mxu1 %v188_v18  ;;  %601 = vmatprep.subr.mxu0 %v329_v29 }
  0x16   :  { %569 = vmatprep.subr.mxu1 %v187_v19  ;;  %602 = vmatpush3.msra.mxu0 %v329_v29 }
  0x17   :  { %570 = vmatpush3.msra.mxu1 %v187_v19  ;;  %603 = vmatprep.subr.mxu0 %v328_v30 }
  0x18   :  { %571 = vmatprep.subr.mxu1 %v186_v20  ;;  %604 = vmatpush3.msra.mxu0 %v328_v30 }
  0x19   :  { %572 = vmatpush3.msra.mxu1 %v186_v20  ;;  %605 = vmatprep.subr.mxu0 %v327_v31 }
  0x1a   :  { %573 = vmatprep.subr.mxu1 %v185_v21  ;;  %606 = vmatpush3.msra.mxu0 %v327_v31 }
  0x1b   :  { %574 = vmatpush3.msra.mxu1 %v185_v21  ;;  %607 = vmatprep.subr.mxu0 %v326_v57 }
  0x1c   :  { %575 = vmatprep.subr.mxu1 %v184_v22  ;;  %608 = vmatpush3.msra.mxu0 %v326_v57 }
  0x1d   :  { %576 = vmatpush3.msra.mxu1 %v184_v22  ;;  %609 = vmatprep.subr.mxu0 %v325_v58 }
  0x1e   :  { %577 = vmatprep.subr.mxu1 %v183_v23  ;;  %610 = vmatpush3.msra.mxu0 %v325_v58 }
  0x1f   :  { %578 = vmatpush3.msra.mxu1 %v183_v23  ;;  %611 = vmatprep.subr.mxu0 %v324_v59 }
  0x20   :  { %579 = vmatprep.subr.mxu1 %v182_v24  ;;  %612 = vmatpush3.msra.mxu0 %v324_v59 }
  0x21   :  { %580 = vmatpush3.msra.mxu1 %v182_v24  ;;  %613 = vmatprep.subr.mxu0 %v323_v60 }
  0x22   :  { %581 = vmatprep.subr.mxu1 %v181_v25  ;;  %614 = vmatpush3.msra.mxu0 %v323_v60 }
  0x23   :  { %582 = vmatpush3.msra.mxu1 %v181_v25  ;;  %615 = vmatprep.subr.mxu0 %v322_v61 }
  0x24   :  { %616 = vmatpush3.msra.mxu0 %v322_v61 }
  0x25   :  { %617 = vmatprep.subr.mxu0 %v321_v62 }
  0x26   :  { %618 = vmatpush3.msra.mxu0 %v321_v62 }
  0x27   :  { %619 = vmatprep.subr.mxu0 %v320_v63 }
  0x28   :  { %620 = vmatpush3.msra.mxu0 %v320_v63 }
  0x29   :  { %621 = vmatprep.subr.mxu0 %v319_v0 }
  0x2a   :  { %622 = vmatpush3.msra.mxu0 %v319_v0 }
  0x2b   :  { %623 = vmatprep.subr.mxu0 %v318_v1 }
  0x2c   :  { %624 = vmatpush3.msra.mxu0 %v318_v1 }
  0x2d   :  { %625 = vmatprep.subr.mxu0 %v317_v2 }
  0x2e   :  { %626 = vmatpush3.msra.mxu0 %v317_v2 }
  0xc6   :  { %v541_v33 = vpop.f32.mrf.mxu0 }
  0xc7   :  { %v140_v34 = vadd.f32 %v541_v33, %v466_v32 }
  0xc8   :  { %v134_v35 = vpop.f32.mrf.mxu0 }
  0xc9   :  { %v135_v36 = vadd.f32 %v466_v32, %v134_v35 }
  0xca   :  { %v544_v37 = vpop.f32.mrf.mxu0 }
  0xcb   :  { %639 = vtanh.f32 %v135_v36  ;;  %v150_v38 = vadd.f32 %v544_v37, %v466_v32 }
  0xcc   :  { %641 = vtanh.f32 %v140_v34  ;;  %v144_v39 = vpop.f32.mrf.mxu0 }
  0xcd   :  { %v145_v40 = vadd.f32 %v466_v32, %v144_v39 }
  0xce   :  { %v547_v41 = vpop.f32.mrf.mxu0 }
  0xcf   :  { %643 = vtanh.f32 %v145_v40  ;;  %v160_v42 = vadd.f32 %v547_v41, %v466_v32 }
  0xd0   :  { %645 = vtanh.f32 %v150_v38  ;;  %v154_v43 = vpop.f32.mrf.mxu0 }
  0xd1   :  { %v155_v44 = vadd.f32 %v466_v32, %v154_v43 }
  0xd2   :  { %v550_v45 = vpop.f32.mrf.mxu0 }
  0xd3   :  { %647 = vtanh.f32 %v155_v44  ;;  %v170_v46 = vadd.f32 %v550_v45, %v466_v32 }
  0xd4   :  { %649 = vtanh.f32 %v160_v42  ;;  %v164_v47 = vpop.f32.mrf.mxu0 }
  0xd5   :  { %v165_v48 = vadd.f32 %v466_v32, %v164_v47 }
  0xd7   :  { %651 = vtanh.f32 %v165_v48 }
  0xd8   :  { %v640_v49 = vpop.eup %639  ;;  %653 = vtanh.f32 %v170_v46 }
  0xd9   :  { %v642_v50 = vpop.eup %641  ;;  %583 = vmatprep.mubr.f32.mxu1 %v640_v49 }
  0xda   :  { %584 = vmatmul.mubr.f32.vlgmr.msra.gmra.mxu1 %v642_v50 }
  0xdc   :  { %v644_v51 = vpop.eup %643 }
  0xdd   :  { %v646_v52 = vpop.eup %645  ;;  %586 = vmatprep.mubr.f32.mxu1 %v644_v51 }
  0xde   :  { %587 = vmatmul.mubr.f32.gmra.mxu1 %v646_v52 }
  0xe0   :  { %v648_v53 = vpop.eup %647 }
  0xe1   :  { %v650_v54 = vpop.eup %649  ;;  %589 = vmatprep.mubr.f32.mxu1 %v648_v53 }
  0xe2   :  { %590 = vmatmul.mubr.f32.gmra.mxu1 %v650_v54 }
  0xe4   :  { %v652_v55 = vpop.eup %651 }
  0xe5   :  { %v654_v56 = vpop.eup %653  ;;  %592 = vmatprep.mubr.f32.mxu1 %v652_v55 }
  0xe6   :  { %593 = vmatmul.mubr.f32.gmra.mxu1 %v654_v56 }
 0x19a   :  { %v585_v4 = vpop.f32.mrf.mxu1 }
 0x19b   :  { %v276_v5 = vadd.f32 %v585_v4, %v475_v3 }
 0x19c   :  { %v270_v6 = vpop.f32.mrf.mxu1 }
 0x19d   :  { %v271_v7 = vadd.f32 %v475_v3, %v270_v6 }
 0x19e   :  { %v588_v8 = vpop.f32.mrf.mxu1 }
 0x19f   :  { %655 = vtanh.f32 %v271_v7  ;;  %v286_v9 = vadd.f32 %v588_v8, %v475_v3 }
 0x1a0   :  { %657 = vtanh.f32 %v276_v5  ;;  %v280_v10 = vpop.f32.mrf.mxu1 }
 0x1a1   :  { %v281_v11 = vadd.f32 %v475_v3, %v280_v10 }
 0x1a2   :  { %v591_v12 = vpop.f32.mrf.mxu1 }
 0x1a3   :  { %659 = vtanh.f32 %v281_v11  ;;  %v296_v13 = vadd.f32 %v591_v12, %v475_v3 }
 0x1a4   :  { %661 = vtanh.f32 %v286_v9  ;;  %v290_v14 = vpop.f32.mrf.mxu1 }
 0x1a5   :  { %v291_v15 = vadd.f32 %v475_v3, %v290_v14 }
 0x1a6   :  { %v594_v16 = vpop.f32.mrf.mxu1 }
 0x1a7   :  { %663 = vtanh.f32 %v291_v15  ;;  %v306_v17 = vadd.f32 %v594_v16, %v475_v3 }
 0x1a8   :  { %665 = vtanh.f32 %v296_v13  ;;  %v300_v18 = vpop.f32.mrf.mxu1 }
 0x1a9   :  { %v301_v19 = vadd.f32 %v475_v3, %v300_v18 }
 0x1ab   :  { %667 = vtanh.f32 %v301_v19 }
 0x1ac   :  { %v656_v20 = vpop.eup %655  ;;  %669 = vtanh.f32 %v306_v17 }
 0x1ad   :  { %v658_v21 = vpop.eup %657  ;;  %627 = vmatprep.mubr.f32.mxu0 %v656_v20 }
 0x1ae   :  { %628 = vmatmul.mubr.f32.vlgmr.msra.gmra.mxu0 %v658_v21 }
 0x1b0   :  { %v660_v22 = vpop.eup %659 }
 0x1b1   :  { %v662_v23 = vpop.eup %661  ;;  %630 = vmatprep.mubr.f32.mxu0 %v660_v22 }
 0x1b2   :  { %631 = vmatmul.mubr.f32.gmra.mxu0 %v662_v23 }
 0x1b4   :  { %v664_v24 = vpop.eup %663 }
 0x1b5   :  { %v666_v25 = vpop.eup %665  ;;  %633 = vmatprep.mubr.f32.mxu0 %v664_v24 }
 0x1b6   :  { %634 = vmatmul.mubr.f32.gmra.mxu0 %v666_v25 }
 0x1b8   :  { %v668_v26 = vpop.eup %667 }
 0x1b9   :  { %v670_v27 = vpop.eup %669  ;;  %636 = vmatprep.mubr.f32.mxu0 %v668_v26 }
 0x1ba   :  { %637 = vmatmul.mubr.f32.gmra.mxu0 %v670_v27 }
 0x26e   :  { %v629_v29 = vpop.f32.mrf.mxu0 }
 0x26f   :  { %v412_v30 = vadd.f32 %v629_v29, %v476_v28 }
 0x270   :  { %v406_v31 = vpop.f32.mrf.mxu0 }
 0x271   :  { %v446_v32 = vmax.f32 %v412_v30, 0.0  ;;  %v407_v33 = vadd.f32 %v476_v28, %v406_v31 }
 0x272   :  { %v632_v34 = vpop.f32.mrf.mxu0 }
 0x273   :  { %455 = vst.msk [vmem:[%s893_s7 + $0x8] sm:$0xff] %vm453_vm1, %v446_v32  ;;  %v445_v35 = vmax.f32 %v407_v33, 0.0  ;;  %v422_v36 = vadd.f32 %v632_v34, %v476_v28 }
 0x274   :  { %v416_v37 = vpop.f32.mrf.mxu0 }
 0x275   :  { %454 = vst.msk [vmem:[%s893_s7] sm:$0xff] %vm453_vm1, %v445_v35  ;;  %v448_v38 = vmax.f32 %v422_v36, 0.0  ;;  %v417_v39 = vadd.f32 %v476_v28, %v416_v37 }
 0x276   :  { %v635_v40 = vpop.f32.mrf.mxu0 }
 0x277   :  { %457 = vst.msk [vmem:[%s893_s7 + $0x18] sm:$0xff] %vm453_vm1, %v448_v38  ;;  %v447_v41 = vmax.f32 %v417_v39, 0.0  ;;  %v432_v42 = vadd.f32 %v635_v40, %v476_v28 }
 0x278   :  { %v426_v43 = vpop.f32.mrf.mxu0 }
 0x279   :  { %456 = vst.msk [vmem:[%s893_s7 + $0x10] sm:$0xff] %vm453_vm1, %v447_v41  ;;  %v450_v44 = vmax.f32 %v432_v42, 0.0  ;;  %v427_v45 = vadd.f32 %v476_v28, %v426_v43 }
 0x27a   :  { %v638_v46 = vpop.f32.mrf.mxu0 }
 0x27b   :  { %459 = vst.msk [vmem:[%s893_s7 + $0x28] sm:$0xff] %vm453_vm1, %v450_v44  ;;  %v449_v47 = vmax.f32 %v427_v45, 0.0  ;;  %v442_v48 = vadd.f32 %v638_v46, %v476_v28 }
 0x27c   :  { %v436_v49 = vpop.f32.mrf.mxu0 }
 0x27d   :  { %458 = vst.msk [vmem:[%s893_s7 + $0x20] sm:$0xff] %vm453_vm1, %v449_v47  ;;  %v452_v50 = vmax.f32 %v442_v48, 0.0  ;;  %v437_v51 = vadd.f32 %v476_v28, %v436_v49 }
 0x27f   :  { %461 = vst.msk [vmem:[%s893_s7 + $0x38] sm:$0xff] %vm453_vm1, %v452_v50  ;;  %v451_v52 = vmax.f32 %v437_v51, 0.0 }
 0x281   :  { %460 = vst.msk [vmem:[%s893_s7 + $0x30] sm:$0xff] %vm453_vm1, %v451_v52 }

</bundles_post_ra>
